<compile_context>
chip_gen: v6e
topology: v6e:2x2x1
jax: 0.10.0
libtpu: 0.0.40
codegen_flags: <defaults>
</compile_context>

<pallas_src>
import functools
import math

import jax
import jax.numpy as jnp
from jax import lax
from jax.experimental import pallas as pl
from jax.experimental.pallas import tpu as pltpu


def _sdpa_kernel(q_ref, k_ref, v_ref, mask_ref, ctx_ref, attn_ref, *, scale):
    # Per-grid-step tiles (B and H squeezed out of every block):
    #   q (tq, D), k (Sk, D), v (Sk, D), mask (tq|1, Sk|1) int8
    #   outputs: ctx (tq, D), attn (tq, Sk)
    q = q_ref[...]
    k = k_ref[...]
    v = v_ref[...]

    # Fold 1/sqrt(d_k) into the small q tile (f32 multiply, then back to the
    # MXU input dtype): Sk/D fewer VPU multiplies than scaling the scores.
    q_scaled = (q.astype(jnp.float32) * jnp.float32(scale)).astype(q.dtype)

    # scores = (q*scale) @ k^T: contract the last dims directly (no k.T / XLU).
    scores = lax.dot_general(
        q_scaled, k,
        dimension_numbers=(((1,), (1,)), ((), ())),
        preferred_element_type=jnp.float32,
    )

    # masked_fill_(mask, -1e9); the mask tile broadcasts over tq / Sk if the
    # caller's mask has size-1 dims there.  Matches torch fully-masked rows.
    scores = jnp.where(mask_ref[...] != 0, jnp.float32(-1e9), scores)

    # Numerically stable softmax over keys.  Exact divide: `attn` is returned
    # to the caller, so no approx reciprocal on this path.
    m = jnp.max(scores, axis=-1, keepdims=True)
    e = jnp.exp(scores - m)
    attn = e / jnp.sum(e, axis=-1, keepdims=True)

    # Downcast once, store attn first (f32 temporaries die early), reuse the
    # downcast operand for the PV matmul when dtypes agree.
    attn_lo = attn.astype(attn_ref.dtype)
    attn_ref[...] = attn_lo
    pv = attn_lo if attn_lo.dtype == v.dtype else attn.astype(v.dtype)
    ctx_ref[...] = jnp.dot(pv, v, preferred_element_type=jnp.float32).astype(ctx_ref.dtype)


def _vmem_capacity_bytes():
    try:
        info = pltpu.get_tpu_info()
        cap = getattr(info, "vmem_capacity_bytes", None)
        if cap:
            return int(cap)
    except Exception:
        pass
    # Conservative fallback (v7x-sized) if the query is unavailable.
    return 64 * 1024 * 1024


def _pick_query_tile(sq, sk, d, in_bytes, out_bytes, budget):
    """Largest query tile (divisor of Sq) whose per-step VMEM footprint fits."""

    def need(tq):
        kv = 2 * 2 * sk * d * in_bytes       # K, V (double-buffered by pipeline)
        qb = 2 * tq * d * in_bytes           # q tile
        mk = 2 * tq * sk * 1                 # int8 mask tile (upper bound)
        ao = 2 * tq * sk * out_bytes         # attn output tile
        co = 2 * tq * d * out_bytes          # ctx output tile
        tmp = 3 * tq * sk * 4                # live f32 scores / e / attn
        return kv + qb + mk + ao + co + tmp

    cands = [c for c in (512, 256, 128, 64, 32, 16, 8) if sq % c == 0]
    if not cands:
        return sq                            # small / odd Sq: use the full dim
    for c in cands:
        if need(c) <= budget:
            return c
    return cands[-1]


def scaled_dot_product_attention(q, k, v, attention_mask):
    """q, k, v: (B, H, S, D); attention_mask broadcastable to (B, H, Sq, Sk).

    Returns (context, attn) matching the PyTorch module (nonzero mask entries
    are filled with -1e9 before the softmax).
    """
    B, H, Sq, D = q.shape
    Sk = k.shape[2]
    scale = 1.0 / math.sqrt(D)

    # Keep the mask in its natural (broadcast) shape; the broadcast is encoded
    # in the BlockSpec index_map below instead of materializing B*H*Sq*Sk bytes.
    m = jnp.asarray(attention_mask)
    if m.ndim < 4:
        m = m.reshape((1,) * (4 - m.ndim) + m.shape)
    mask8 = m.astype(jnp.int8)               # 4x smaller DMA than int32
    mB, mH, mSq, mSk = mask8.shape
    assert mB in (1, B) and mH in (1, H) and mSq in (1, Sq) and mSk in (1, Sk), (
        "attention_mask must be broadcastable to (B, H, Sq, Sk)")

    in_bytes = jnp.dtype(q.dtype).itemsize
    out_bytes = in_bytes
    vmem_cap = _vmem_capacity_bytes()
    # ~3/4 of physical VMEM: ~96 MiB on 128 MiB parts (v5e/v6e), ~48 MiB on v7x.
    vmem_limit = min((vmem_cap * 3) // 4, 100 * 1024 * 1024)
    tq = _pick_query_tile(Sq, Sk, D, in_bytes, out_bytes, vmem_limit)

    mask_tq = tq if mSq == Sq else 1

    def mask_index_map(b, h, i):
        return (b if mB != 1 else 0,
                h if mH != 1 else 0,
                i if mSq != 1 else 0,
                0)

    kernel = functools.partial(_sdpa_kernel, scale=scale)
    grid = (B, H, Sq // tq)

    ctx, attn = pl.pallas_call(
        kernel,
        out_shape=(
            jax.ShapeDtypeStruct((B, H, Sq, D), q.dtype),
            jax.ShapeDtypeStruct((B, H, Sq, Sk), q.dtype),
        ),
        grid_spec=pltpu.PrefetchScalarGridSpec(
            num_scalar_prefetch=0,
            grid=grid,
            in_specs=[
                pl.BlockSpec((None, None, tq, D), lambda b, h, i: (b, h, i, 0)),   # q tile
                pl.BlockSpec((None, None, Sk, D), lambda b, h, i: (b, h, 0, 0)),   # full K
                pl.BlockSpec((None, None, Sk, D), lambda b, h, i: (b, h, 0, 0)),   # full V
                pl.BlockSpec((None, None, mask_tq, mSk), mask_index_map),          # mask (broadcast-aware)
            ],
            out_specs=[
                pl.BlockSpec((None, None, tq, D), lambda b, h, i: (b, h, i, 0)),   # ctx
                pl.BlockSpec((None, None, tq, Sk), lambda b, h, i: (b, h, i, 0)),  # attn
            ],
        ),
        compiler_params=pltpu.CompilerParams(
            # Query-tile axis innermost + "arbitrary": K/V stay resident per
            # (b, h), and the v7x megacore split lands on the B/H axes.
            dimension_semantics=("parallel", "parallel", "arbitrary"),
            vmem_limit_bytes=int(vmem_limit),
        ),
    )(q, k, v, mask8)

    # TODO(synk): if callers stop consuming `attn`, switch to a flash-style
    # online softmax over Sk and drop the O(S^2) writeback.
    # TODO(synk): on v7x at very long Sk, move K/V to memory_space=pl.ANY with a
    # single-buffered VMEM scratch (make_async_copy once per head) to halve K/V
    # residency.
    # TODO(synk): when D < 128 and profiling shows masked vst.msk stores
    # dominating, block several heads per grid step for lane-dense ctx output.
    # TODO(synk): optional bf16 cast of q/k/v behind a flag for v5e f32 inputs.
    return ctx, attn


def _reference(q, k, v, attention_mask):
    d_k = q.shape[-1]
    scores = jnp.einsum("bhqd,bhkd->bhqk", q, k) / math.sqrt(d_k)
    scores = jnp.where(attention_mask, jnp.float32(-1e9), scores)
    attn = jax.nn.softmax(scores, axis=-1)
    ctx = jnp.einsum("bhqk,bhkd->bhqd", attn, v)
    return ctx, attn


if __name__ == "__main__":
    key = jax.random.PRNGKey(0)
    kq, kk, kv_ = jax.random.split(key, 3)

    B, H, S, D = 2, 4, 8, 32  # batch, heads, seq, d_k
    q = jax.random.normal(kq, (B, H, S, D), dtype=jnp.float32)
    k = jax.random.normal(kk, (B, H, S, D), dtype=jnp.float32)
    v = jax.random.normal(kv_, (B, H, S, D), dtype=jnp.float32)
    # Causal boolean mask (True == masked out), passed in its natural broadcast
    # shape (1, 1, S, S) — no upstream materialization.
    attention_mask = jnp.triu(jnp.ones((S, S), dtype=bool), k=1)[None, None]

    ctx, attn = scaled_dot_product_attention(q, k, v, attention_mask)
    jax.block_until_ready((ctx, attn))

    ctx_ref, attn_ref = _reference(q, k, v, attention_mask)
    assert jnp.allclose(ctx, ctx_ref, atol=1e-5, rtol=1e-5), float(
        jnp.max(jnp.abs(ctx - ctx_ref)))
    assert jnp.allclose(attn, attn_ref, atol=1e-5, rtol=1e-5), float(
        jnp.max(jnp.abs(attn - attn_ref)))

    print("KERNEL_OK")
</pallas_src>

<mosaic_0001>
module attributes {stable_mosaic.version = 11 : i64} {
  func.func @_sdpa_kernel(%arg0: i32, %arg1: i32, %arg2: i32, %arg3: memref<1x1x8x32xf32, #tpu.memory_space<vmem>>, %arg4: memref<1x1x8x32xf32, #tpu.memory_space<vmem>>, %arg5: memref<1x1x8x32xf32, #tpu.memory_space<vmem>>, %arg6: memref<1x1x8x8xi8, #tpu.memory_space<vmem>>, %arg7: memref<1x1x8x32xf32, #tpu.memory_space<vmem>>, %arg8: memref<1x1x8x8xf32, #tpu.memory_space<vmem>>) attributes {dimension_semantics = [#tpu.dimension_semantics<parallel>, #tpu.dimension_semantics<parallel>, #tpu.dimension_semantics<arbitrary>], iteration_bounds = array<i64: 2, 4, 1>, scalar_prefetch = 0 : i64, scratch_operands = 0 : i64, tpu.core_type = #tpu.core_type<tc>, window_params = [{transform_indices = @transform_0, window_bounds = array<i64: 1, 1, 8, 32>}, {transform_indices = @transform_1, window_bounds = array<i64: 1, 1, 8, 32>}, {transform_indices = @transform_2, window_bounds = array<i64: 1, 1, 8, 32>}, {transform_indices = @transform_3, window_bounds = array<i64: 1, 1, 8, 8>}, {transform_indices = @transform_4, window_bounds = array<i64: 1, 1, 8, 32>}, {transform_indices = @transform_5, window_bounds = array<i64: 1, 1, 8, 8>}]} {
    %c0 = arith.constant 0 : index
    %c0_0 = arith.constant 0 : index
    %c0_1 = arith.constant 0 : index
    %c0_2 = arith.constant 0 : index
    %0 = vector.load %arg3[%c0, %c0_0, %c0_1, %c0_2] : memref<1x1x8x32xf32, #tpu.memory_space<vmem>>, vector<1x1x8x32xf32>
    %1 = vector.shape_cast %0 : vector<1x1x8x32xf32> to vector<8x32xf32>
    %c0_3 = arith.constant 0 : index
    %c0_4 = arith.constant 0 : index
    %c0_5 = arith.constant 0 : index
    %c0_6 = arith.constant 0 : index
    %2 = vector.load %arg4[%c0_3, %c0_4, %c0_5, %c0_6] : memref<1x1x8x32xf32, #tpu.memory_space<vmem>>, vector<1x1x8x32xf32>
    %3 = vector.shape_cast %2 : vector<1x1x8x32xf32> to vector<8x32xf32>
    %c0_7 = arith.constant 0 : index
    %c0_8 = arith.constant 0 : index
    %c0_9 = arith.constant 0 : index
    %c0_10 = arith.constant 0 : index
    %4 = vector.load %arg5[%c0_7, %c0_8, %c0_9, %c0_10] : memref<1x1x8x32xf32, #tpu.memory_space<vmem>>, vector<1x1x8x32xf32>
    %5 = vector.shape_cast %4 : vector<1x1x8x32xf32> to vector<8x32xf32>
    %cst = arith.constant 0.176776692 : f32
    %6 = vector.broadcast %cst : f32 to vector<8x32xf32>
    %7 = arith.mulf %1, %6 : vector<8x32xf32>
    %cst_11 = arith.constant dense<0.000000e+00> : vector<8x8xf32>
    %8 = tpu.matmul %7, %3, %cst_11 {dimension_numbers = #tpu.dot_dimension_numbers<[1], [1], [0], [0], [0, 0, 1, 0], [], []>} : vector<8x32xf32>, vector<8x32xf32>, vector<8x8xf32> -> vector<8x8xf32>
    %c0_12 = arith.constant 0 : index
    %c0_13 = arith.constant 0 : index
    %c0_14 = arith.constant 0 : index
    %c0_15 = arith.constant 0 : index
    %9 = vector.load %arg6[%c0_12, %c0_13, %c0_14, %c0_15] : memref<1x1x8x8xi8, #tpu.memory_space<vmem>>, vector<1x1x8x8xi8>
    %10 = vector.shape_cast %9 : vector<1x1x8x8xi8> to vector<8x8xi8>
    %c0_i8 = arith.constant 0 : i8
    %11 = vector.broadcast %c0_i8 : i8 to vector<8x8xi8>
    %12 = arith.cmpi ne, %10, %11 : vector<8x8xi8>
    %cst_16 = arith.constant -1.000000e+09 : f32
    %13 = vector.broadcast %cst_16 : f32 to vector<8x8xf32>
    %14 = arith.select %12, %13, %8 : vector<8x8xi1>, vector<8x8xf32>
    %cst_17 = arith.constant dense<0xFF800000> : vector<8xf32>
    %15 = vector.multi_reduction <maximumf>, %14, %cst_17 [1] : vector<8x8xf32> to vector<8xf32>
    %16 = vector.shape_cast %15 : vector<8xf32> to vector<8x1xf32>
    %17 = vector.broadcast %16 : vector<8x1xf32> to vector<8x8xf32>
    %18 = arith.subf %14, %17 : vector<8x8xf32>
    %19 = math.exp %18 : vector<8x8xf32>
    %cst_18 = arith.constant dense<0.000000e+00> : vector<8xf32>
    %20 = vector.multi_reduction <add>, %19, %cst_18 [1] : vector<8x8xf32> to vector<8xf32>
    %21 = vector.shape_cast %20 : vector<8xf32> to vector<8x1xf32>
    %22 = vector.broadcast %21 : vector<8x1xf32> to vector<8x8xf32>
    %23 = arith.divf %19, %22 : vector<8x8xf32>
    %c0_19 = arith.constant 0 : index
    %c0_20 = arith.constant 0 : index
    %c0_21 = arith.constant 0 : index
    %c0_22 = arith.constant 0 : index
    %24 = vector.load %arg8[%c0_19, %c0_20, %c0_21, %c0_22] : memref<1x1x8x8xf32, #tpu.memory_space<vmem>>, vector<1x1x8x8xf32>
    %25 = vector.shape_cast %24 : vector<1x1x8x8xf32> to vector<8x8xf32>
    %26 = vector.shape_cast %23 : vector<8x8xf32> to vector<1x1x8x8xf32>
    tpu.vector_store %arg8[%c0_19, %c0_20, %c0_21, %c0_22], %26 {strides = array<i32>} : memref<1x1x8x8xf32, #tpu.memory_space<vmem>>, vector<1x1x8x8xf32>,
    %cst_23 = arith.constant dense<0.000000e+00> : vector<8x32xf32>
    %27 = tpu.matmul %23, %5, %cst_23 {dimension_numbers = #tpu.dot_dimension_numbers<[1], [0], [0], [1], [0, 0, 1, 1], [], []>} : vector<8x8xf32>, vector<8x32xf32>, vector<8x32xf32> -> vector<8x32xf32>
    %c0_24 = arith.constant 0 : index
    %c0_25 = arith.constant 0 : index
    %c0_26 = arith.constant 0 : index
    %c0_27 = arith.constant 0 : index
    %28 = vector.load %arg7[%c0_24, %c0_25, %c0_26, %c0_27] : memref<1x1x8x32xf32, #tpu.memory_space<vmem>>, vector<1x1x8x32xf32>
    %29 = vector.shape_cast %28 : vector<1x1x8x32xf32> to vector<8x32xf32>
    %30 = vector.shape_cast %27 : vector<8x32xf32> to vector<1x1x8x32xf32>
    tpu.vector_store %arg7[%c0_24, %c0_25, %c0_26, %c0_27], %30 {strides = array<i32>} : memref<1x1x8x32xf32, #tpu.memory_space<vmem>>, vector<1x1x8x32xf32>,
    return
  }
  func.func @transform_0(%arg0: i32, %arg1: i32, %arg2: i32) -> (i32, i32, i32, i32) {
    %c0_i32 = arith.constant 0 : i32
    %c0_i32_0 = arith.constant 0 : i32
    return %arg0, %arg1, %arg2, %c0_i32 : i32, i32, i32, i32
  }
  func.func @transform_1(%arg0: i32, %arg1: i32, %arg2: i32) -> (i32, i32, i32, i32) {
    %c0_i32 = arith.constant 0 : i32
    %c0_i32_0 = arith.constant 0 : i32
    %c0_i32_1 = arith.constant 0 : i32
    return %arg0, %arg1, %c0_i32, %c0_i32_0 : i32, i32, i32, i32
  }
  func.func @transform_2(%arg0: i32, %arg1: i32, %arg2: i32) -> (i32, i32, i32, i32) {
    %c0_i32 = arith.constant 0 : i32
    %c0_i32_0 = arith.constant 0 : i32
    %c0_i32_1 = arith.constant 0 : i32
    return %arg0, %arg1, %c0_i32, %c0_i32_0 : i32, i32, i32, i32
  }
  func.func @transform_3(%arg0: i32, %arg1: i32, %arg2: i32) -> (i32, i32, i32, i32) {
    %c0_i32 = arith.constant 0 : i32
    %c0_i32_0 = arith.constant 0 : i32
    %c0_i32_1 = arith.constant 0 : i32
    %c0_i32_2 = arith.constant 0 : i32
    return %c0_i32, %c0_i32_0, %arg2, %c0_i32_1 : i32, i32, i32, i32
  }
  func.func @transform_4(%arg0: i32, %arg1: i32, %arg2: i32) -> (i32, i32, i32, i32) {
    %c0_i32 = arith.constant 0 : i32
    %c0_i32_0 = arith.constant 0 : i32
    return %arg0, %arg1, %arg2, %c0_i32 : i32, i32, i32, i32
  }
  func.func @transform_5(%arg0: i32, %arg1: i32, %arg2: i32) -> (i32, i32, i32, i32) {
    %c0_i32 = arith.constant 0 : i32
    %c0_i32_0 = arith.constant 0 : i32
    return %arg0, %arg1, %arg2, %c0_i32 : i32, i32, i32, i32
  }
}

</mosaic_0001>

<bundles_post_ra>
// kernel: tpu_custom_call.1
= control target key start
LH: loop header
LB: loop body
LE: loop exit
PB: predicated region body
PF: predicated region fallthrough
CT: control target
= control target key end

     0   :  { %s1447_s0 = inlined_call_operand.hbm [shape: f32[2,4,8,32], index: 0, kind: input, shape index: {}]   ;;  %s1448_s1 = inlined_call_operand.hbm [shape: f32[2,4,8,32], index: 1, kind: input, shape index: {}]   ;;  %s1449_s2 = inlined_call_operand.hbm [shape: f32[2,4,8,32], index: 2, kind: input, shape index: {}]   ;;  %s1450_s3 = inlined_call_operand.vmem [shape: s8[1,1,8,8], index: 3, kind: input, shape index: {}]   ;;  %s1451_s4 = inlined_call_operand.hbm [shape: f32[2,4,8,32], index: 4, kind: output, shape index: {0}]   ;;  %s1452_s5 = inlined_call_operand.hbm [shape: f32[2,4,8,8], index: 5, kind: output, shape index: {1}]  }
   0x1   :  { %1460 = sst [smem:[#allocation22_spill]] %s1448_s1 }
   0x2   :  { %11 = vsyncpa [#allocation3], 0 }
   0x3   :  { %13 = vsyncpa [#allocation3 + $0x1], 0 }
   0x4   :  { %14 = vsyncpa [#allocation6], 0 }
   0x5   :  { %16 = vsyncpa [#allocation6 + $0x1], 0 }
   0x6   :  { %17 = vsyncpa [#allocation4], 0 }
   0x7   :  { %19 = vsyncpa [#allocation4 + $0x1], 0 }
   0x8   :  { %20 = vsyncpa [#allocation10], 0 }
   0x9   :  { %22 = vsyncpa [#allocation10 + $0x1], 0  ;;  %s1181_s18 = smov 0   ;;  %s1183_s19 = smov 0  }
   0xa   :  { %s1185_s20 = smov 0   ;;  %s1187_s21 = smov 0  }
   0xb   :  { %s1189_s22 = smov 0   ;;  %s1191_s23 = smov 0  }
   0xc   :  { %s1193_s24 = smov 0   ;;  %s1195_s25 = smov 0  }
   0xd LB: > { %1461 = sst [smem:[#allocation15_spill]] %s1113_s18  ;;  %s1222_s26 = sadd.s32 4294967295, %s1141_s25   ;;  %s1141_s25 = sphi %s1195_s25, %s28_s25   ;;  %s1137_s24 = sphi %s1193_s24, %s1482_s24   ;;  %s1133_s23 = sphi %s1191_s23, %s1481_s23   ;;  %s1129_s22 = sphi %s1189_s22, %s1480_s22   ;;  %s1125_s21 = sphi %s1187_s21, %s1479_s21   ;;  %s1121_s20 = sphi %s1185_s20, %s1485_s20   ;;  %s1117_s19 = sphi %s1183_s19, %s1484_s19   ;;  %s1113_s18 = sphi %s1181_s18, %s1483_s18  }
   0xe   : > { %1462 = sst [smem:[#allocation16_spill]] %s1133_s23  ;;  %s783_s27 = sadd.s32 4294967294, %s1141_s25  }
   0xf   : > { %1463 = sst [smem:[#allocation17_spill]] %s1137_s24  ;;  %s43_s28 = sadd.s32 1, %s1133_s23 }
  0x10   : > { %s47_s29 = sadd.s32 1, %s1137_s24  ;;  %p45_p0 = scmp.ge.s32.totalorder %s43_s28, 4 }
  0x11   : > { %s58_s30 = sadd.s32 1, %s1121_s20  ;;  %p65_p1 = scmp.ne.s32.totalorder %s1121_s20, %s1117_s19 }
  0x12   : > { %p66_p2 = scmp.eq.s32.totalorder %s1141_s25, 0  ;;  %s1487_s28 = smov (%p45_p0, %s43_s28), 0 }
  0x13   : > { %1464 = sst [smem:[#allocation18_spill]] %s1487_s28  ;;  %s1489_s29 = smov (!%p45_p0, %s47_s29), %s1137_s24 }
  0x14   : > { %s52_s6 = ssub.s32 %s1133_s23, %s1487_s28  ;;  %p1236_p3 = por %p66_p2, %p65_p1 }
  0x15   : > { %p49_p4 = scmp.ge.s32.totalorder %s1489_s29, 2  ;;  %p71_p5 = scmp.ne.s32.totalorder %s1117_s19, %s1113_s18 }
  0x16   : > { %p72_p6 = scmp.eq.s32.totalorder %s1222_s26, 0  ;;  %p181_p7 = scmp.eq.s32.totalorder %s1222_s26, 7 }
  0x17   : > { %s1491_s29 = smov (%p49_p4, %s1489_s29), 0  ;;  %p187_p10 = scmp.eq.s32.totalorder %s783_s27, 7 }
  0x18   : > { %1466 = sst [smem:[#allocation19_spill]] %s1491_s29  ;;  %p1246_p8 = por %p72_p6, %p71_p5 }
  0x19   : > { %p1250_p9 = por %p181_p7, %p65_p1  ;;  %s51_s10 = ssub.s32 %s1137_s24, %s1491_s29 }
  0x1a   : > { %s53_s11 = sor.u32 %s52_s6, %s51_s10  ;;  %p1256_p12 = por %p187_p10, %p71_p5 }
  0x1b   : > { %p56_p11 = scmp.eq.s32.totalorder %s53_s11, 0  ;;  %p854_p13 = scmp.lt.s32.totalorder %s1141_s25, 8 }
  0x1c   : > { %s1469_s12 = scalar_select %p1256_p12, 1, 0 }
  0x1d   : > { %s1454_s13 = sand.u32 1, %s1121_s20   ;;  %s788_s16 = sshll.u32 %s1137_s24, 2 }
  0x1e   : > { %1470 = sst [smem:[#allocation20_spill]] %s1469_s12  ;;  %s1267_s15 = sshll.u32 %s1454_s13, 3 }
  0x1f   : > { %s1263_s14 = scalar_select %p56_p11, %s1121_s20, %s58_s30  }
  0x20   : > { %s254_s17 = sadd.s32 %s1133_s23, %s788_s16  ;;  %p1273_p0 = pnand %p854_p13, %p1236_p3 }
  0x21   : > { %1471 = sst [smem:[#allocation21_spill]] %s1263_s14  ;;  %s1277_s6 = sshll.u32 %s254_s17, 7 }
  0x22   : > { %s265_s10 = sand.u32 1, %s1141_s25   ;;  %s1473_s1 = sld [smem:[#allocation22_spill]] }
  0x23   : > { %s269_s13 = scalar_lea.vmem [#allocation5], %s1267_s15  ;;  %p796_p1 = scmp.ge.s32.totalorder %s1141_s25, 1 }
  0x24   : > { %s278_s28 = sshll.u32 %s269_s13, 4  ;;  %p303_p2 = scmp.lt.s32.totalorder %s1141_s25, 9  ;;  %s279_s28 = int_to_ptr.vmem [resolvable:$true] %s278_s28 }
  0x25   : > { %s1287_s7 = scalar_lea.sflag [#allocation6], %s265_s10  ;;  %p929_p3 = pneg %p1273_p0 }
  0x26   : > { %s940_s16 = scalar_lea.vmem %s279_s28, 128  ;;  %s1143_s17 = smov [#allocation5]  }
  0x27   : > { %p941_p4 = scmp.ne.s32.totalorder %s279_s28, %s940_s16  ;;  %s945_s24 = sshll.u32 %s1143_s17, 4  ;;  %s946_s24 = int_to_ptr.vmem [resolvable:$false] %s945_s24 }
  0x28   : > { %s276_s29 = scalar_lea.hbm %s1473_s1, %s1277_s6  ;;  %s947_s11 = scalar_lea.vmem %s946_s24, 256 }
  0x29   : > { %p943_p5 = pnand %p941_p4, %p929_p3  ;;  %p948_p7 = scmp.lt.s32.totalorder %s279_s28, %s946_s24 }
  0x2a   : > { %p949_p10 = scmp.lt.s32.totalorder %s947_s11, %s940_s16 }
  0x2b   : > { %p944_p6 = pneg %p943_p5 }
  0x2c   : > { %p950_p11 = por %p949_p10, %p948_p7 }
  0x2e   : > { %p951_p13 = pnand %p950_p11, %p944_p6 }
  0x30   : > { %954 = shalt.err (!%p951_p13)
}
  0x31   : > { %843 = dma.hbm_to_vmem [thread:$0]  (!%p1273_p0), %s276_s29, 128, %s279_s28, %s1287_s7  }
  0x32   : > { %p1301_p4 = pnand %p796_p1, %p303_p2  ;;  %s256_s30 = scalar_lea.hbm %s1447_s0, %s1277_s6 }
  0x33   : > { %s248_s16 = scalar_lea.vmem [#allocation2], %s1267_s15  ;;  %s296_s23 = scalar_lea.hbm %s1449_s2, %s1277_s6 }
  0x34   : > { %s258_s17 = sshll.u32 %s248_s16, 4  ;;  %s1475_s14 = sand.u32 1, %s1121_s20   ;;  %s259_s17 = int_to_ptr.vmem [resolvable:$true] %s258_s17 }
  0x35   : > { %s245_s12 = scalar_lea.sflag [#allocation3], %s1475_s14  ;;  %s968_s28 = scalar_lea.vmem %s259_s17, 128 }
  0x36   : > { %p969_p5 = scmp.ne.s32.totalorder %s259_s17, %s968_s28  ;;  %s1144_s29 = smov [#allocation2]  }
  0x37   : > { %s973_s18 = sshll.u32 %s1144_s29, 4  ;;  %s974_s18 = int_to_ptr.vmem [resolvable:$false] %s973_s18 }
  0x38   : > { %p971_p1 = pnand %p969_p5, %p929_p3  ;;  %s975_s24 = scalar_lea.vmem %s974_s18, 256 }
  0x39   : > { %p976_p6 = scmp.lt.s32.totalorder %s259_s17, %s974_s18  ;;  %p977_p7 = scmp.lt.s32.totalorder %s975_s24, %s968_s28 }
  0x3a   : > { %p972_p2 = pneg %p971_p1 }
  0x3b   : > { %p978_p10 = por %p977_p7, %p976_p6 }
  0x3d   : > { %p979_p11 = pnand %p978_p10, %p972_p2 }
  0x3f   : > { %982 = shalt.err (!%p979_p11)
}
  0x40   : > { %840 = dma.hbm_to_vmem [thread:$0]  (!%p1273_p0), %s256_s30, 128, %s259_s17, %s245_s12  }
  0x41   : > { %s289_s1 = scalar_lea.vmem [#allocation7], %s1267_s15  ;;  %s1145_s16 = smov [#allocation7]  }
  0x42   : > { %s298_s14 = sshll.u32 %s289_s1, 4  ;;  %s1001_s18 = sshll.u32 %s1145_s16, 4  ;;  %s299_s14 = int_to_ptr.vmem [resolvable:$true] %s298_s14  ;;  %s1002_s18 = int_to_ptr.vmem [resolvable:$false] %s1001_s18 }
  0x43   : > { %s996_s10 = scalar_lea.vmem %s299_s14, 128  ;;  %s1003_s11 = scalar_lea.vmem %s1002_s18, 256 }
  0x44   : > { %p997_p13 = scmp.ne.s32.totalorder %s299_s14, %s996_s10  ;;  %p1004_p2 = scmp.lt.s32.totalorder %s299_s14, %s1002_s18 }
  0x45   : > { %p1005_p6 = scmp.lt.s32.totalorder %s1003_s11, %s996_s10 }
  0x46   : > { %p999_p5 = pnand %p997_p13, %p929_p3 }
  0x47   : > { %p1006_p7 = por %p1005_p6, %p1004_p2 }
  0x48   : > { %p1000_p1 = pneg %p999_p5 }
  0x4a   : > { %p1007_p10 = pnand %p1006_p7, %p1000_p1 }
  0x4c   : > { %1010 = shalt.err (!%p1007_p10)
}
  0x4d   : > { %846 = dma.hbm_to_vmem [thread:$0]  (!%p1273_p0), %s296_s23, 128, %s299_s14, %s1287_s7  }
  0x4e   : > { %307 = sbr.rel (%p1301_p4) target bundleno = 806 (0x326), region = 36  ;;  %s1336_s30 = sand.u32 (!%p1301_p4), 1, %s1117_s19  }
  0x4f   : > { %s1339_s17 = sshll.u32 (!%p1301_p4), %s1336_s30, 3  ;;  %s310_s27 = scalar_lea.sflag (!%p1301_p4), [#allocation3], %s1336_s30 }
  0x50   : > { %s313_s28 = scalar_lea.vmem (!%p1301_p4), [#allocation2], %s1339_s17 }
  0x53   : > { %1096 = dma.done.wait (%p1246_p8), %s310_s27, 128  }
  0x54   : > { %1098 = vsyncadd (%p1246_p8), %s310_s27, 4294967168  ;;  %s318_s23 = sand.u32 1, %s1222_s26   ;;  %s322_s7 = scalar_lea.vmem [#allocation5], %s1339_s17 }
  0x55   : > { %s319_s6 = scalar_lea.sflag [#allocation6], %s318_s23 }
  0x56   : > { %1100 = dma.done.wait (%p1246_p8), %s319_s6, 256  }
  0x57   : > { %1102 = vsyncadd (%p1246_p8), %s319_s6, 4294967040  ;;  %v1146_v0 = vmov 0.0   ;;  %vm1147_vm0 = vmmov 0   ;;  %vm387_vm1 = vcmask 261120   ;;  %v384_v1 = vld [vmem:[%s322_s7] sm:$0xff]  ;;  %v383_v2 = vld [vmem:[%s313_s28] sm:$0xff] }
  0x58   : > { %817 = vmatprep.subr.mxu0 %v1146_v0  ;;  %819 = vmatprep.mubr.msk.f32.mxu0 %vm1147_vm0, %v1146_v0  ;;  %v386_v3 = vmul.f32 0.17677669, %v383_v2  ;;  %v464_v4 = vld [vmem:[%s1450_s3] sm:$0x3]  ;;  %v1148_v5 = vmov 0   ;;  %vm470_vm4 = vcmask 64512  }
  0x59   : > { %822 = vmatprep.subr.mxu1 %v1146_v0  ;;  %824 = vmatprep.mubr.msk.f32.mxu1 %vm1147_vm0, %v1146_v0  ;;  %vm465_vm2 = vnez %v464_v4  ;;  %s331_s8 = scalar_lea.vmem [#allocation7], %s1339_s17  ;;  %s376_s29 = scalar_lea.vmem [#allocation9], %s1339_s17 }
  0x5a   : > { %818 = vmatpush3.xpose.msk.msra.mxu0 %vm387_vm1, %v384_v1  ;;  %v466_v6 = vsel %vm465_vm2, 16843009, %v1148_v5  ;;  %v385_v17 = vld [vmem:[%s331_s8] sm:$0xff]  ;;  %s807_s24 = sshll.u32 %s1129_s22, 2  ;;  %s595_s11 = sshll.u32 %s376_s29, 4  ;;  %s596_s11 = int_to_ptr.vmem [resolvable:$true] %s595_s11 }
  0x5b   : > { %v467_v7 = vunpack.c.0.s8 %v466_v6  ;;  %823 = vmatpush3.msra.mxu1 %v385_v17  ;;  %s1366_s1 = sadd.s32 %s1125_s21, %s807_s24  ;;  %s563_s12 = scalar_lea.sflag [#allocation10], %s1336_s30 }
  0x5c   : > { %s808_s14 = sshll.u32 %s1366_s1, 7  ;;  %s1011_s15 = scalar_lea.vmem %s596_s11, 128 }
  0x5d   : > { %820 = vmatmul.mubr.msk.f32.vlgmr.msra.gmra.mxu0 %vm387_vm1, %v386_v3  ;;  %vm468_vm3 = vcmp.ne.s32.totalorder %v467_v7, 0  ;;  %s593_s18 = scalar_lea.hbm %s1452_s5, %s808_s14  ;;  %p1012_p8 = scmp.ne.s32.totalorder %s596_s11, %s1011_s15 }
  0x5e   : > { %s1149_s27 = smov [#allocation9]  }
  0x5f   : > { %p1013_p0 = pnand %p1012_p8, %p1250_p9  ;;  %s1015_s22 = sshll.u32 %s1149_s27, 4  ;;  %s1016_s22 = int_to_ptr.vmem [resolvable:$false] %s1015_s22 }
  0x60   : > { %s1017_s21 = scalar_lea.vmem %s1016_s22, 256  ;;  %p1018_p4 = scmp.lt.s32.totalorder %s596_s11, %s1016_s22 }
  0x61   : > { %p1014_p3 = pneg %p1013_p0  ;;  %p1019_p11 = scmp.lt.s32.totalorder %s1017_s21, %s1011_s15 }
  0x63   : > { %p1020_p13 = por %p1019_p11, %p1018_p4 }
  0x65   : > { %p1021_p5 = pnand %p1020_p13, %p1014_p3 }
 0x11d   : > { %v460_v8 = vpop.f32.mrf.mxu0 }
 0x11e   : > { %v469_v9 = vsel %vm468_vm3, -1e+09, %v460_v8 }
 0x11f   : > { %v821_v10 = vpop.f32.mrf.mxu0  ;;  %v471_v11 = vsel %vm470_vm4, %v469_v9, -inf }
 0x120   : > { %472 = vmax.xlane.f32.xlu0 %v471_v11 }
 0x1a9   : > { %v473_v12 = vpop.xlane.xlu0 %472 }
 0x1aa   : > { %v474_v13 = vsub.f32 %v469_v9, %v473_v12 }
 0x1ac   : > { %v475_v14 = vmul.f32 1.442695, %v474_v13 }
 0x1ae   : > { %923 = vpow2.f32 %v475_v14 }
 0x1bb   : > { %v924_v15 = vpop.eup %923 }
 0x1bc   : > { %v477_v16 = vsel %vm470_vm4, %v924_v15, 0.0 }
 0x1bd   : > { %478 = vadd.xlane.f32.xlu0 %v477_v16 }
 0x246   : > { %v479_v18 = vpop.xlane.xlu0 %478 }
 0x247   : > { %925 = vrcp.f32 %v479_v18 }
 0x254   : > { %v926_v19 = vpop.eup %925 }
 0x255   : > { %v481_v20 = vmul.f32 %v926_v19, %v924_v15 }
 0x257   : > { %825 = vmatmul.mubr.msk.f32.vlgmr.msra.gmra.mxu1 %vm470_vm4, %v481_v20  ;;  %482 = vst.msk [vmem:[%s376_s29] sm:$0xff] %vm470_vm4, %v481_v20 }
 0x258   : > { %1024 = shalt.err (!%p1021_p5)
}
 0x259   : > { %s1025_s28 = scalar_lea.hbm %s593_s18, 128  ;;  %s1029_s7 = scalar_lea.hbm %s1452_s5, 1024 }
 0x25a   : > { %p1026_p1 = scmp.ne.s32.totalorder %s593_s18, %s1025_s28  ;;  %p1030_p7 = scmp.lt.s32.totalorder %s593_s18, %s1452_s5 }
 0x25b   : > { %p1031_p10 = scmp.lt.s32.totalorder %s1029_s7, %s1025_s28 }
 0x25c   : > { %p1027_p2 = pnand %p1026_p1, %p1250_p9 }
 0x25d   : > { %p1032_p8 = por %p1031_p10, %p1030_p7 }
 0x25e   : > { %p1028_p6 = pneg %p1027_p2 }
 0x260   : > { %p1033_p0 = pnand %p1032_p8, %p1028_p6 }
 0x262   : > { %1036 = shalt.err (!%p1033_p0)
}
 0x263   : > { %834 = dma.vmem_to_hbm [thread:$0]  (%p1250_p9), %s596_s11, 128, %s593_s18, %s563_s12  }
 0x264   : > { %s369_s8 = scalar_lea.vmem [#allocation8], %s1339_s17  ;;  %s1393_s16 = scalar_lea.hbm %s1451_s4, %s808_s14 }
 0x265   : > { %s579_s29 = sshll.u32 %s369_s8, 4  ;;  %s558_s15 = scalar_lea.sflag [#allocation4], %s1336_s30  ;;  %s1395_s29 = int_to_ptr.vmem [resolvable:$true] %s579_s29 }
 0x266   : > { %s1037_s27 = scalar_lea.vmem %s1395_s29, 128  ;;  %s1150_s17 = smov [#allocation8]  }
 0x267   : > { %p1038_p3 = scmp.ne.s32.totalorder %s1395_s29, %s1037_s27  ;;  %s1041_s1 = sshll.u32 %s1150_s17, 4  ;;  %s1042_s1 = int_to_ptr.vmem [resolvable:$false] %s1041_s1 }
 0x268   : > { %s1043_s14 = scalar_lea.vmem %s1042_s1, 256  ;;  %p1044_p13 = scmp.lt.s32.totalorder %s1395_s29, %s1042_s1 }
 0x269   : > { %p1039_p4 = pnand %p1038_p3, %p1250_p9  ;;  %p1045_p5 = scmp.lt.s32.totalorder %s1043_s14, %s1037_s27 }
 0x26b   : > { %p1040_p11 = pneg %p1039_p4  ;;  %p1046_p1 = por %p1045_p5, %p1044_p13 }
 0x26d   : > { %p1047_p2 = pnand %p1046_p1, %p1040_p11 }
 0x317   : > { %v552_v21 = vpop.f32.mrf.mxu1 }
 0x318   : > { %556 = vst.msk [vmem:[%s369_s8] sm:$0xff] %vm387_vm1, %v552_v21 }
 0x319   : > { %v826_v22 = vpop.f32.mrf.mxu1 }
 0x31a   : > { %1050 = shalt.err (!%p1047_p2)
}
 0x31b   : > { %s1051_s18 = scalar_lea.hbm %s1393_s16, 128  ;;  %s1055_s12 = scalar_lea.hbm %s1451_s4, 1024 }
 0x31c   : > { %p1052_p6 = scmp.ne.s32.totalorder %s1393_s16, %s1051_s18  ;;  %p1056_p8 = scmp.lt.s32.totalorder %s1393_s16, %s1451_s4 }
 0x31d   : > { %p1057_p0 = scmp.lt.s32.totalorder %s1055_s12, %s1051_s18 }
 0x31e   : > { %p1053_p7 = pnand %p1052_p6, %p1250_p9 }
 0x31f   : > { %p1058_p3 = por %p1057_p0, %p1056_p8 }
 0x320   : > { %p1054_p10 = pneg %p1053_p7 }
 0x322   : > { %p1059_p4 = pnand %p1058_p3, %p1054_p10 }
 0x324   : > { %1062 = shalt.err (!%p1059_p4)
}
 0x325   : > { %833 = dma.vmem_to_hbm [thread:$0]  (%p1250_p9), %s1395_s29, 128, %s1393_s16, %s558_s15  }
 0x326 PF: > { %s1476_s28 = sld [smem:[#allocation15_spill]]  ;;  %p855_p11 = scmp.ge.s32.totalorder %s1141_s25, 2 }
 0x328   : > { %p848_p13 = pnand %p855_p11, %p1256_p12 }
 0x32a   : > { %p849_p5 = pneg %p848_p13 }
 0x32c   : > { %s607_s6 = sand.u32 1, %s1476_s28  }
 0x32d   : > { %s608_s7 = scalar_lea.sflag [#allocation4], %s607_s6 }
 0x32e   : > { %1104 = dma.done.wait (%p849_p5), %s608_s7, 128  }
 0x32f   : > { %1106 = vsyncadd (%p849_p5), %s608_s7, 4294967168  ;;  %s617_s26 = scalar_lea.sflag [#allocation10], %s607_s6 }
 0x330   : > { %1108 = dma.done.wait (%p849_p5), %s617_s26, 128  }
 0x331   : > { %1110 = vsyncadd (%p849_p5), %s617_s26, 4294967168  ;;  %s28_s25 = sadd.s32 1, %s1141_s25   ;;  %s1478_s9 = sld [smem:[#allocation21_spill]] }
 0x332   : > { %p25_p1 = scmp.ge.s32.totalorder %s28_s25, 10   ;;  %s1479_s21 = sld [smem:[#allocation16_spill]] }
 0x333   : > { %s1480_s22 = sld [smem:[#allocation17_spill]]  ;;  %s1483_s18 = smov %s1117_s19 }
 0x334   : > { %s1481_s23 = sld [smem:[#allocation18_spill]]  ;;  %s1484_s19 = smov %s1121_s20 }
 0x335   : > { %s1482_s24 = sld [smem:[#allocation19_spill]]  ;;  %27 = sbr.rel (!%p25_p1) target bundleno = 13 (0xd), region = 125 }
 0x337   : > { %s1485_s20 = smov %s1478_s9 }
 0x33a   :  { %622 = vsyncpa [#allocation3], 1 }
 0x33b   :  { %624 = vsyncpa [#allocation3 + $0x1], 1 }
 0x33c   :  { %625 = vsyncpa [#allocation6], 1 }
 0x33d   :  { %627 = vsyncpa [#allocation6 + $0x1], 1 }
 0x33e   :  { %628 = vsyncpa [#allocation4], 1 }
 0x33f   :  { %630 = vsyncpa [#allocation4 + $0x1], 1 }
 0x340   :  { %631 = vsyncpa [#allocation10], 1 }
 0x341   :  { %633 = vsyncpa [#allocation10 + $0x1], 1 }

</bundles_post_ra>
